<compile_context>
chip_gen: v5e
topology: v5e:2x2
jax: 0.10.0
libtpu: 0.0.40
codegen_flags: <defaults>
</compile_context>

<pallas_src>
import math
import functools

import jax
import jax.numpy as jnp
from jax.experimental import pallas as pl
from jax.experimental.pallas import tpu as pltpu


def _attn_kernel(x_ref, wqkv_ref, bqkv_ref, wp_ref, bp_ref, mask_ref, o_ref,
                 *, n_head):
    # One grid step == one batch element; everything lives in VMEM.
    xb = x_ref[0]                                 # (T, C) f32
    T, C = xb.shape
    D = C // n_head
    scale = 1.0 / math.sqrt(D)

    x_bf = xb.astype(jnp.bfloat16)

    # Fused QKV projection: one (T, C) x (C, 3C) MXU GEMM, f32 accumulation,
    # f32 bias added once on the wide slab.
    qkv = jnp.dot(x_bf, wqkv_ref[...],
                  preferred_element_type=jnp.float32) + bqkv_ref[0]   # (T, 3C)

    # Fold the 1/sqrt(D) scale into q once (cheaper than scaling (T,T) scores).
    q = (qkv[:, 0 * C:1 * C] * scale).astype(jnp.bfloat16)
    k = qkv[:, 1 * C:2 * C].astype(jnp.bfloat16)
    v = qkv[:, 2 * C:3 * C].astype(jnp.bfloat16)

    bias = mask_ref[...]                          # (T, T) additive causal bias

    # Distribute the output projection over heads:  y @ Wp == sum_h y_h @ Wp[h].
    # Removes the lane-dim concat entirely; the accumulator stays a lane-dense
    # (T, C) f32 slab, seeded with the projection bias so no final add.
    acc = jnp.zeros((T, C), jnp.float32) + bp_ref[0]

    # n_head is a small static constant -> unrolled at trace time.
    for h in range(n_head):
        qh = q[:, h * D:(h + 1) * D]              # (T, D) bf16
        kh = k[:, h * D:(h + 1) * D]
        vh = v[:, h * D:(h + 1) * D]

        # Scores: contraction over D ("nt" matmul), f32 accumulation.
        att = jax.lax.dot_general(
            qh, kh, (((1,), (1,)), ((), ())),
            preferred_element_type=jnp.float32) + bias        # (T, T) f32

        # Numerically stable softmax in f32; reciprocal goes to the EUP.
        att_max = jnp.max(att, axis=-1, keepdims=True)
        p = jnp.exp(att - att_max)
        inv = pl.reciprocal(jnp.sum(p, axis=-1, keepdims=True), approx=True)
        p = (p * inv).astype(jnp.bfloat16)

        yh = jnp.dot(p, vh, preferred_element_type=jnp.float32)       # (T, D)

        # Per-head slice of the output projection: (T, D) x (D, C) -> (T, C).
        acc = acc + jnp.dot(yh.astype(jnp.bfloat16), wp_ref[h],
                            preferred_element_type=jnp.float32)

    o_ref[0] = acc.astype(o_ref.dtype)


def causal_self_attention(x, params, n_head):
    """x: (B, T, C) float32.  params: (in,out) weights and (C,) biases."""
    B, T, C = x.shape
    assert C % n_head == 0
    D = C // n_head

    # Fused QKV weight/bias (host-side concat is free / one-time).
    wqkv = jnp.concatenate([params["wq"], params["wk"], params["wv"]],
                           axis=1).astype(jnp.bfloat16)              # (C, 3C)
    bqkv = jnp.concatenate([params["bq"], params["bk"], params["bv"]]
                           ).reshape(1, 3 * C).astype(jnp.float32)   # (1, 3C)
    # Output projection split per head along its input dim (free host reshape).
    wp = params["wp"].reshape(n_head, D, C).astype(jnp.bfloat16)     # (H, D, C)
    bp = params["bp"].reshape(1, C).astype(jnp.float32)              # (1, C)

    # Precomputed additive causal bias: 0 on/below diagonal, -1e30 above
    # (finite, so fully-masked / padded rows cannot produce NaN).
    causal = jnp.tril(jnp.ones((T, T), dtype=bool))
    mask_bias = jnp.where(causal, 0.0, -1e30).astype(jnp.float32)

    const = lambda shape: pl.BlockSpec(shape, lambda b, _s=len(shape): (0,) * _s)

    flops = 2 * B * T * C * (3 * C) + 4 * B * T * T * C + 2 * B * T * C * C
    bytes_accessed = (x.size * 4 + wqkv.size * 2 + wp.size * 2 + bqkv.size * 4
                      + bp.size * 4 + mask_bias.size * 4 + B * T * C * 4)

    return pl.pallas_call(
        functools.partial(_attn_kernel, n_head=n_head),
        out_shape=jax.ShapeDtypeStruct((B, T, C), x.dtype),
        grid_spec=pltpu.PrefetchScalarGridSpec(
            num_scalar_prefetch=0,
            grid=(B,),
            in_specs=[
                pl.BlockSpec((1, T, C), lambda b: (b, 0, 0)),   # x
                const((C, 3 * C)),                              # fused Wqkv
                const((1, 3 * C)),                              # fused bqkv
                const((n_head, D, C)),                          # Wp per head
                const((1, C)),                                  # bp
                const((T, T)),                                  # causal bias
            ],
            out_specs=pl.BlockSpec((1, T, C), lambda b: (b, 0, 0)),
        ),
        compiler_params=pltpu.CompilerParams(
            dimension_semantics=("parallel",)),
        cost_estimate=pl.CostEstimate(
            flops=flops,
            transcendentals=B * n_head * T * T,
            bytes_accessed=bytes_accessed),
    )(x, wqkv, bqkv, wp, bp, mask_bias)


def _reference(x, params, n_head):
    """Pure-JAX f32 reference mirroring the PyTorch forward (eval mode)."""
    B, T, C = x.shape
    D = C // n_head
    scale = 1.0 / math.sqrt(D)

    def proj(w, b):
        return x @ w + b

    q = proj(params["wq"], params["bq"]).reshape(B, T, n_head, D).transpose(0, 2, 1, 3)
    k = proj(params["wk"], params["bk"]).reshape(B, T, n_head, D).transpose(0, 2, 1, 3)
    v = proj(params["wv"], params["bv"]).reshape(B, T, n_head, D).transpose(0, 2, 1, 3)

    att = jnp.einsum("bhqd,bhkd->bhqk", q, k) * scale
    mask = jnp.tril(jnp.ones((T, T), dtype=bool))
    att = jnp.where(mask[None, None], att, -jnp.inf)
    att = jax.nn.softmax(att, axis=-1)
    y = jnp.einsum("bhqk,bhkd->bhqd", att, v)
    y = y.transpose(0, 2, 1, 3).reshape(B, T, C)
    return y @ params["wp"] + params["bp"]


if __name__ == "__main__":
    # Small config: block_size >= T, n_embd=32, n_head=4.
    B, T, C, n_head = 2, 8, 32, 4

    key = jax.random.PRNGKey(0)
    keys = jax.random.split(key, 9)
    bound = 1.0 / math.sqrt(C)   # torch.nn.Linear default init range

    params = {
        "wq": jax.random.uniform(keys[0], (C, C), jnp.float32, -bound, bound),
        "bq": jax.random.uniform(keys[1], (C,), jnp.float32, -bound, bound),
        "wk": jax.random.uniform(keys[2], (C, C), jnp.float32, -bound, bound),
        "bk": jax.random.uniform(keys[3], (C,), jnp.float32, -bound, bound),
        "wv": jax.random.uniform(keys[4], (C, C), jnp.float32, -bound, bound),
        "bv": jax.random.uniform(keys[5], (C,), jnp.float32, -bound, bound),
        "wp": jax.random.uniform(keys[6], (C, C), jnp.float32, -bound, bound),
        "bp": jax.random.uniform(keys[7], (C,), jnp.float32, -bound, bound),
    }
    x = jax.random.normal(keys[8], (B, T, C), jnp.float32)

    out = causal_self_attention(x, params, n_head)
    out = jax.block_until_ready(out)

    ref = _reference(x, params, n_head)
    assert out.shape == (B, T, C)
    # bf16 matmul operands + approx reciprocal vs f32 reference -> loose tol.
    assert jnp.allclose(out, ref, atol=5e-2, rtol=5e-2), "mismatch vs reference"

    print("KERNEL_OK")
</pallas_src>

<mosaic_0001>
module attributes {stable_mosaic.version = 11 : i64} {
  func.func @_attn_kernel(%arg0: i32, %arg1: memref<1x8x32xf32, #tpu.memory_space<vmem>>, %arg2: memref<32x96xbf16, #tpu.memory_space<vmem>>, %arg3: memref<1x96xf32, #tpu.memory_space<vmem>>, %arg4: memref<4x8x32xbf16, #tpu.memory_space<vmem>>, %arg5: memref<1x32xf32, #tpu.memory_space<vmem>>, %arg6: memref<8x8xf32, #tpu.memory_space<vmem>>, %arg7: memref<1x8x32xf32, #tpu.memory_space<vmem>>) attributes {dimension_semantics = [#tpu.dimension_semantics<parallel>], iteration_bounds = array<i64: 2>, scalar_prefetch = 0 : i64, scratch_operands = 0 : i64, tpu.core_type = #tpu.core_type<tc>, window_params = [{transform_indices = @transform_0, window_bounds = array<i64: 1, 8, 32>}, {pipeline_mode = #tpu.pipeline_mode<synchronous>, transform_indices = @transform_1, window_bounds = array<i64: 32, 96>}, {pipeline_mode = #tpu.pipeline_mode<synchronous>, transform_indices = @transform_2, window_bounds = array<i64: 1, 96>}, {pipeline_mode = #tpu.pipeline_mode<synchronous>, transform_indices = @transform_3, window_bounds = array<i64: 4, 8, 32>}, {pipeline_mode = #tpu.pipeline_mode<synchronous>, transform_indices = @transform_4, window_bounds = array<i64: 1, 32>}, {pipeline_mode = #tpu.pipeline_mode<synchronous>, transform_indices = @transform_5, window_bounds = array<i64: 8, 8>}, {transform_indices = @transform_6, window_bounds = array<i64: 1, 8, 32>}]} {
    %c0 = arith.constant 0 : index
    %c0_0 = arith.constant 0 : index
    %c0_1 = arith.constant 0 : index
    %0 = vector.load %arg1[%c0, %c0_0, %c0_1] : memref<1x8x32xf32, #tpu.memory_space<vmem>>, vector<1x8x32xf32>
    %1 = vector.shape_cast %0 : vector<1x8x32xf32> to vector<8x32xf32>
    %2 = arith.truncf %1 : vector<8x32xf32> to vector<8x32xbf16>
    %c0_2 = arith.constant 0 : index
    %c0_3 = arith.constant 0 : index
    %3 = vector.load %arg2[%c0_2, %c0_3] : memref<32x96xbf16, #tpu.memory_space<vmem>>, vector<32x96xbf16>
    %cst = arith.constant dense<0.000000e+00> : vector<8x96xf32>
    %4 = tpu.matmul %2, %3, %cst {dimension_numbers = #tpu.dot_dimension_numbers<[1], [0], [0], [1], [0, 0, 1, 1], [], []>} : vector<8x32xbf16>, vector<32x96xbf16>, vector<8x96xf32> -> vector<8x96xf32>
    %c0_4 = arith.constant 0 : index
    %c0_5 = arith.constant 0 : index
    %5 = vector.load %arg3[%c0_4, %c0_5] : memref<1x96xf32, #tpu.memory_space<vmem>>, vector<1x96xf32>
    %6 = vector.shape_cast %5 : vector<1x96xf32> to vector<96xf32>
    %7 = vector.shape_cast %6 : vector<96xf32> to vector<1x96xf32>
    %8 = vector.broadcast %7 : vector<1x96xf32> to vector<8x96xf32>
    %9 = arith.addf %4, %8 : vector<8x96xf32>
    %10 = vector.extract_strided_slice %9 {offsets = [0, 0], sizes = [8, 32], strides = [1, 1]} : vector<8x96xf32> to vector<8x32xf32>
    %cst_6 = arith.constant 0.353553385 : f32
    %11 = vector.broadcast %cst_6 : f32 to vector<8x32xf32>
    %12 = arith.mulf %10, %11 : vector<8x32xf32>
    %13 = arith.truncf %12 : vector<8x32xf32> to vector<8x32xbf16>
    %14 = vector.extract_strided_slice %9 {offsets = [0, 32], sizes = [8, 32], strides = [1, 1]} : vector<8x96xf32> to vector<8x32xf32>
    %15 = arith.truncf %14 : vector<8x32xf32> to vector<8x32xbf16>
    %16 = vector.extract_strided_slice %9 {offsets = [0, 64], sizes = [8, 32], strides = [1, 1]} : vector<8x96xf32> to vector<8x32xf32>
    %17 = arith.truncf %16 : vector<8x32xf32> to vector<8x32xbf16>
    %c0_7 = arith.constant 0 : index
    %c0_8 = arith.constant 0 : index
    %18 = vector.load %arg6[%c0_7, %c0_8] : memref<8x8xf32, #tpu.memory_space<vmem>>, vector<8x8xf32>
    %cst_9 = arith.constant 0.000000e+00 : f32
    %19 = vector.broadcast %cst_9 : f32 to vector<8x32xf32>
    %c0_10 = arith.constant 0 : index
    %c0_11 = arith.constant 0 : index
    %20 = vector.load %arg5[%c0_10, %c0_11] : memref<1x32xf32, #tpu.memory_space<vmem>>, vector<1x32xf32>
    %21 = vector.shape_cast %20 : vector<1x32xf32> to vector<32xf32>
    %22 = vector.shape_cast %21 : vector<32xf32> to vector<1x32xf32>
    %23 = vector.broadcast %22 : vector<1x32xf32> to vector<8x32xf32>
    %24 = arith.addf %19, %23 : vector<8x32xf32>
    %25 = vector.extract_strided_slice %13 {offsets = [0, 0], sizes = [8, 8], strides = [1, 1]} : vector<8x32xbf16> to vector<8x8xbf16>
    %26 = vector.extract_strided_slice %15 {offsets = [0, 0], sizes = [8, 8], strides = [1, 1]} : vector<8x32xbf16> to vector<8x8xbf16>
    %27 = vector.extract_strided_slice %17 {offsets = [0, 0], sizes = [8, 8], strides = [1, 1]} : vector<8x32xbf16> to vector<8x8xbf16>
    %cst_12 = arith.constant dense<0.000000e+00> : vector<8x8xf32>
    %28 = tpu.matmul %25, %26, %cst_12 {dimension_numbers = #tpu.dot_dimension_numbers<[1], [1], [0], [0], [0, 0, 1, 0], [], []>} : vector<8x8xbf16>, vector<8x8xbf16>, vector<8x8xf32> -> vector<8x8xf32>
    %29 = arith.addf %28, %18 : vector<8x8xf32>
    %cst_13 = arith.constant dense<0xFF800000> : vector<8xf32>
    %30 = vector.multi_reduction <maximumf>, %29, %cst_13 [1] : vector<8x8xf32> to vector<8xf32>
    %31 = vector.shape_cast %30 : vector<8xf32> to vector<8x1xf32>
    %32 = vector.broadcast %31 : vector<8x1xf32> to vector<8x8xf32>
    %33 = arith.subf %29, %32 : vector<8x8xf32>
    %34 = math.exp %33 : vector<8x8xf32>
    %cst_14 = arith.constant dense<0.000000e+00> : vector<8xf32>
    %35 = vector.multi_reduction <add>, %34, %cst_14 [1] : vector<8x8xf32> to vector<8xf32>
    %36 = vector.shape_cast %35 : vector<8xf32> to vector<8x1xf32>
    %37 = tpu.reciprocal %36 {approx = true} : vector<8x1xf32> -> vector<8x1xf32>
    %38 = vector.broadcast %37 : vector<8x1xf32> to vector<8x8xf32>
    %39 = arith.mulf %34, %38 : vector<8x8xf32>
    %40 = arith.truncf %39 : vector<8x8xf32> to vector<8x8xbf16>
    %cst_15 = arith.constant dense<0.000000e+00> : vector<8x8xf32>
    %41 = tpu.matmul %40, %27, %cst_15 {dimension_numbers = #tpu.dot_dimension_numbers<[1], [0], [0], [1], [0, 0, 1, 1], [], []>} : vector<8x8xbf16>, vector<8x8xbf16>, vector<8x8xf32> -> vector<8x8xf32>
    %42 = arith.truncf %41 : vector<8x8xf32> to vector<8x8xbf16>
    %c0_16 = arith.constant 0 : index
    %c0_17 = arith.constant 0 : index
    %c0_18 = arith.constant 0 : index
    %43 = vector.load %arg4[%c0_16, %c0_17, %c0_18] : memref<4x8x32xbf16, #tpu.memory_space<vmem>>, vector<1x8x32xbf16>
    %44 = vector.shape_cast %43 : vector<1x8x32xbf16> to vector<8x32xbf16>
    %cst_19 = arith.constant dense<0.000000e+00> : vector<8x32xf32>
    %45 = tpu.matmul %42, %44, %cst_19 {dimension_numbers = #tpu.dot_dimension_numbers<[1], [0], [0], [1], [0, 0, 1, 1], [], []>} : vector<8x8xbf16>, vector<8x32xbf16>, vector<8x32xf32> -> vector<8x32xf32>
    %46 = arith.addf %24, %45 : vector<8x32xf32>
    %47 = vector.extract_strided_slice %13 {offsets = [0, 8], sizes = [8, 8], strides = [1, 1]} : vector<8x32xbf16> to vector<8x8xbf16>
    %48 = vector.extract_strided_slice %15 {offsets = [0, 8], sizes = [8, 8], strides = [1, 1]} : vector<8x32xbf16> to vector<8x8xbf16>
    %49 = vector.extract_strided_slice %17 {offsets = [0, 8], sizes = [8, 8], strides = [1, 1]} : vector<8x32xbf16> to vector<8x8xbf16>
    %cst_20 = arith.constant dense<0.000000e+00> : vector<8x8xf32>
    %50 = tpu.matmul %47, %48, %cst_20 {dimension_numbers = #tpu.dot_dimension_numbers<[1], [1], [0], [0], [0, 0, 1, 0], [], []>} : vector<8x8xbf16>, vector<8x8xbf16>, vector<8x8xf32> -> vector<8x8xf32>
    %51 = arith.addf %50, %18 : vector<8x8xf32>
    %cst_21 = arith.constant dense<0xFF800000> : vector<8xf32>
    %52 = vector.multi_reduction <maximumf>, %51, %cst_21 [1] : vector<8x8xf32> to vector<8xf32>
    %53 = vector.shape_cast %52 : vector<8xf32> to vector<8x1xf32>
    %54 = vector.broadcast %53 : vector<8x1xf32> to vector<8x8xf32>
    %55 = arith.subf %51, %54 : vector<8x8xf32>
    %56 = math.exp %55 : vector<8x8xf32>
    %cst_22 = arith.constant dense<0.000000e+00> : vector<8xf32>
    %57 = vector.multi_reduction <add>, %56, %cst_22 [1] : vector<8x8xf32> to vector<8xf32>
    %58 = vector.shape_cast %57 : vector<8xf32> to vector<8x1xf32>
    %59 = tpu.reciprocal %58 {approx = true} : vector<8x1xf32> -> vector<8x1xf32>
    %60 = vector.broadcast %59 : vector<8x1xf32> to vector<8x8xf32>
    %61 = arith.mulf %56, %60 : vector<8x8xf32>
    %62 = arith.truncf %61 : vector<8x8xf32> to vector<8x8xbf16>
    %cst_23 = arith.constant dense<0.000000e+00> : vector<8x8xf32>
    %63 = tpu.matmul %62, %49, %cst_23 {dimension_numbers = #tpu.dot_dimension_numbers<[1], [0], [0], [1], [0, 0, 1, 1], [], []>} : vector<8x8xbf16>, vector<8x8xbf16>, vector<8x8xf32> -> vector<8x8xf32>
    %64 = arith.truncf %63 : vector<8x8xf32> to vector<8x8xbf16>
    %c1 = arith.constant 1 : index
    %c0_24 = arith.constant 0 : index
    %c0_25 = arith.constant 0 : index
    %65 = vector.load %arg4[%c1, %c0_24, %c0_25] : memref<4x8x32xbf16, #tpu.memory_space<vmem>>, vector<1x8x32xbf16>
    %66 = vector.shape_cast %65 : vector<1x8x32xbf16> to vector<8x32xbf16>
    %cst_26 = arith.constant dense<0.000000e+00> : vector<8x32xf32>
    %67 = tpu.matmul %64, %66, %cst_26 {dimension_numbers = #tpu.dot_dimension_numbers<[1], [0], [0], [1], [0, 0, 1, 1], [], []>} : vector<8x8xbf16>, vector<8x32xbf16>, vector<8x32xf32> -> vector<8x32xf32>
    %68 = arith.addf %46, %67 : vector<8x32xf32>
    %69 = vector.extract_strided_slice %13 {offsets = [0, 16], sizes = [8, 8], strides = [1, 1]} : vector<8x32xbf16> to vector<8x8xbf16>
    %70 = vector.extract_strided_slice %15 {offsets = [0, 16], sizes = [8, 8], strides = [1, 1]} : vector<8x32xbf16> to vector<8x8xbf16>
    %71 = vector.extract_strided_slice %17 {offsets = [0, 16], sizes = [8, 8], strides = [1, 1]} : vector<8x32xbf16> to vector<8x8xbf16>
    %cst_27 = arith.constant dense<0.000000e+00> : vector<8x8xf32>
    %72 = tpu.matmul %69, %70, %cst_27 {dimension_numbers = #tpu.dot_dimension_numbers<[1], [1], [0], [0], [0, 0, 1, 0], [], []>} : vector<8x8xbf16>, vector<8x8xbf16>, vector<8x8xf32> -> vector<8x8xf32>
    %73 = arith.addf %72, %18 : vector<8x8xf32>
    %cst_28 = arith.constant dense<0xFF800000> : vector<8xf32>
    %74 = vector.multi_reduction <maximumf>, %73, %cst_28 [1] : vector<8x8xf32> to vector<8xf32>
    %75 = vector.shape_cast %74 : vector<8xf32> to vector<8x1xf32>
    %76 = vector.broadcast %75 : vector<8x1xf32> to vector<8x8xf32>
    %77 = arith.subf %73, %76 : vector<8x8xf32>
    %78 = math.exp %77 : vector<8x8xf32>
    %cst_29 = arith.constant dense<0.000000e+00> : vector<8xf32>
    %79 = vector.multi_reduction <add>, %78, %cst_29 [1] : vector<8x8xf32> to vector<8xf32>
    %80 = vector.shape_cast %79 : vector<8xf32> to vector<8x1xf32>
    %81 = tpu.reciprocal %80 {approx = true} : vector<8x1xf32> -> vector<8x1xf32>
    %82 = vector.broadcast %81 : vector<8x1xf32> to vector<8x8xf32>
    %83 = arith.mulf %78, %82 : vector<8x8xf32>
    %84 = arith.truncf %83 : vector<8x8xf32> to vector<8x8xbf16>
    %cst_30 = arith.constant dense<0.000000e+00> : vector<8x8xf32>
    %85 = tpu.matmul %84, %71, %cst_30 {dimension_numbers = #tpu.dot_dimension_numbers<[1], [0], [0], [1], [0, 0, 1, 1], [], []>} : vector<8x8xbf16>, vector<8x8xbf16>, vector<8x8xf32> -> vector<8x8xf32>
    %86 = arith.truncf %85 : vector<8x8xf32> to vector<8x8xbf16>
    %c2 = arith.constant 2 : index
    %c0_31 = arith.constant 0 : index
    %c0_32 = arith.constant 0 : index
    %87 = vector.load %arg4[%c2, %c0_31, %c0_32] : memref<4x8x32xbf16, #tpu.memory_space<vmem>>, vector<1x8x32xbf16>
    %88 = vector.shape_cast %87 : vector<1x8x32xbf16> to vector<8x32xbf16>
    %cst_33 = arith.constant dense<0.000000e+00> : vector<8x32xf32>
    %89 = tpu.matmul %86, %88, %cst_33 {dimension_numbers = #tpu.dot_dimension_numbers<[1], [0], [0], [1], [0, 0, 1, 1], [], []>} : vector<8x8xbf16>, vector<8x32xbf16>, vector<8x32xf32> -> vector<8x32xf32>
    %90 = arith.addf %68, %89 : vector<8x32xf32>
    %91 = vector.extract_strided_slice %13 {offsets = [0, 24], sizes = [8, 8], strides = [1, 1]} : vector<8x32xbf16> to vector<8x8xbf16>
    %92 = vector.extract_strided_slice %15 {offsets = [0, 24], sizes = [8, 8], strides = [1, 1]} : vector<8x32xbf16> to vector<8x8xbf16>
    %93 = vector.extract_strided_slice %17 {offsets = [0, 24], sizes = [8, 8], strides = [1, 1]} : vector<8x32xbf16> to vector<8x8xbf16>
    %cst_34 = arith.constant dense<0.000000e+00> : vector<8x8xf32>
    %94 = tpu.matmul %91, %92, %cst_34 {dimension_numbers = #tpu.dot_dimension_numbers<[1], [1], [0], [0], [0, 0, 1, 0], [], []>} : vector<8x8xbf16>, vector<8x8xbf16>, vector<8x8xf32> -> vector<8x8xf32>
    %95 = arith.addf %94, %18 : vector<8x8xf32>
    %cst_35 = arith.constant dense<0xFF800000> : vector<8xf32>
    %96 = vector.multi_reduction <maximumf>, %95, %cst_35 [1] : vector<8x8xf32> to vector<8xf32>
    %97 = vector.shape_cast %96 : vector<8xf32> to vector<8x1xf32>
    %98 = vector.broadcast %97 : vector<8x1xf32> to vector<8x8xf32>
    %99 = arith.subf %95, %98 : vector<8x8xf32>
    %100 = math.exp %99 : vector<8x8xf32>
    %cst_36 = arith.constant dense<0.000000e+00> : vector<8xf32>
    %101 = vector.multi_reduction <add>, %100, %cst_36 [1] : vector<8x8xf32> to vector<8xf32>
    %102 = vector.shape_cast %101 : vector<8xf32> to vector<8x1xf32>
    %103 = tpu.reciprocal %102 {approx = true} : vector<8x1xf32> -> vector<8x1xf32>
    %104 = vector.broadcast %103 : vector<8x1xf32> to vector<8x8xf32>
    %105 = arith.mulf %100, %104 : vector<8x8xf32>
    %106 = arith.truncf %105 : vector<8x8xf32> to vector<8x8xbf16>
    %cst_37 = arith.constant dense<0.000000e+00> : vector<8x8xf32>
    %107 = tpu.matmul %106, %93, %cst_37 {dimension_numbers = #tpu.dot_dimension_numbers<[1], [0], [0], [1], [0, 0, 1, 1], [], []>} : vector<8x8xbf16>, vector<8x8xbf16>, vector<8x8xf32> -> vector<8x8xf32>
    %108 = arith.truncf %107 : vector<8x8xf32> to vector<8x8xbf16>
    %c3 = arith.constant 3 : index
    %c0_38 = arith.constant 0 : index
    %c0_39 = arith.constant 0 : index
    %109 = vector.load %arg4[%c3, %c0_38, %c0_39] : memref<4x8x32xbf16, #tpu.memory_space<vmem>>, vector<1x8x32xbf16>
    %110 = vector.shape_cast %109 : vector<1x8x32xbf16> to vector<8x32xbf16>
    %cst_40 = arith.constant dense<0.000000e+00> : vector<8x32xf32>
    %111 = tpu.matmul %108, %110, %cst_40 {dimension_numbers = #tpu.dot_dimension_numbers<[1], [0], [0], [1], [0, 0, 1, 1], [], []>} : vector<8x8xbf16>, vector<8x32xbf16>, vector<8x32xf32> -> vector<8x32xf32>
    %112 = arith.addf %90, %111 : vector<8x32xf32>
    %c0_41 = arith.constant 0 : index
    %c0_42 = arith.constant 0 : index
    %c0_43 = arith.constant 0 : index
    %113 = vector.load %arg7[%c0_41, %c0_42, %c0_43] : memref<1x8x32xf32, #tpu.memory_space<vmem>>, vector<1x8x32xf32>
    %114 = vector.shape_cast %113 : vector<1x8x32xf32> to vector<8x32xf32>
    %115 = vector.shape_cast %112 : vector<8x32xf32> to vector<1x8x32xf32>
    tpu.vector_store %arg7[%c0_41, %c0_42, %c0_43], %115 {strides = array<i32>} : memref<1x8x32xf32, #tpu.memory_space<vmem>>, vector<1x8x32xf32>,
    return
  }
  func.func @transform_0(%arg0: i32) -> (i32, i32, i32) {
    %c0_i32 = arith.constant 0 : i32
    %c0_i32_0 = arith.constant 0 : i32
    %c0_i32_1 = arith.constant 0 : i32
    return %arg0, %c0_i32, %c0_i32_0 : i32, i32, i32
  }
  func.func @transform_1(%arg0: i32) -> (i32, i32) {
    %c0_i32 = arith.constant 0 : i32
    %c0_i32_0 = arith.constant 0 : i32
    %c0_i32_1 = arith.constant 0 : i32
    return %c0_i32, %c0_i32_0 : i32, i32
  }
  func.func @transform_2(%arg0: i32) -> (i32, i32) {
    %c0_i32 = arith.constant 0 : i32
    %c0_i32_0 = arith.constant 0 : i32
    %c0_i32_1 = arith.constant 0 : i32
    return %c0_i32, %c0_i32_0 : i32, i32
  }
  func.func @transform_3(%arg0: i32) -> (i32, i32, i32) {
    %c0_i32 = arith.constant 0 : i32
    %c0_i32_0 = arith.constant 0 : i32
    %c0_i32_1 = arith.constant 0 : i32
    %c0_i32_2 = arith.constant 0 : i32
    return %c0_i32, %c0_i32_0, %c0_i32_1 : i32, i32, i32
  }
  func.func @transform_4(%arg0: i32) -> (i32, i32) {
    %c0_i32 = arith.constant 0 : i32
    %c0_i32_0 = arith.constant 0 : i32
    %c0_i32_1 = arith.constant 0 : i32
    return %c0_i32, %c0_i32_0 : i32, i32
  }
  func.func @transform_5(%arg0: i32) -> (i32, i32) {
    %c0_i32 = arith.constant 0 : i32
    %c0_i32_0 = arith.constant 0 : i32
    %c0_i32_1 = arith.constant 0 : i32
    return %c0_i32, %c0_i32_0 : i32, i32
  }
  func.func @transform_6(%arg0: i32) -> (i32, i32, i32) {
    %c0_i32 = arith.constant 0 : i32
    %c0_i32_0 = arith.constant 0 : i32
    %c0_i32_1 = arith.constant 0 : i32
    return %arg0, %c0_i32, %c0_i32_0 : i32, i32, i32
  }
}

</mosaic_0001>

<bundles_post_ra>
// kernel: tpu_custom_call.1
= control target key start
LH: loop header
LB: loop body
LE: loop exit
PB: predicated region body
PF: predicated region fallthrough
CT: control target
= control target key end

     0   :  { %11 = vsyncpa [#allocation3], 0  ;;  %s1420_s0 = inlined_call_operand.hbm [shape: f32[2,8,32], index: 0, kind: input, shape index: {}]   ;;  %s1421_s1 = inlined_call_operand.hbm [shape: bf16[32,96], index: 1, kind: input, shape index: {}]   ;;  %s1422_s2 = inlined_call_operand.vmem [shape: f32[1,96], index: 2, kind: input, shape index: {}]   ;;  %s1423_s3 = inlined_call_operand.hbm [shape: bf16[4,8,32], index: 3, kind: input, shape index: {}]   ;;  %s1424_s4 = inlined_call_operand.vmem [shape: f32[1,32], index: 4, kind: input, shape index: {}]   ;;  %s1425_s5 = inlined_call_operand.hbm [shape: f32[8,8], index: 5, kind: input, shape index: {}]   ;;  %s1426_s6 = inlined_call_operand.hbm [shape: f32[2,8,32], index: 6, kind: output, shape index: {}]  }
   0x1   :  { %13 = vsyncpa [#allocation3 + $0x1], 0 }
   0x2   :  { %14 = vsyncpa [#allocation6], 0 }
   0x3   :  { %15 = vsyncpa [#allocation9], 0 }
   0x4   :  { %16 = vsyncpa [#allocation4], 0 }
   0x5   :  { %18 = vsyncpa [#allocation4 + $0x1], 0  ;;  %s1199_s21 = smov 0   ;;  %s1201_s22 = smov 0  }
   0x6   :  { %s1203_s23 = smov 0   ;;  %s1205_s24 = smov 0  }
   0x7 LB: > { %s197_s27 = sshll.u32 %s1421_s1, 4  ;;  %s1223_s28 = sadd.s32 4294967295, %s1146_s24   ;;  %s1146_s24 = sphi %s1205_s24, %s1437_s24   ;;  %s1142_s23 = sphi %s1203_s23, %s1436_s23   ;;  %s1138_s22 = sphi %s1201_s22, %s1435_s22   ;;  %s1134_s21 = sphi %s1199_s21, %s1434_s21   ;;  %s198_s27 = int_to_ptr.hbm [resolvable:$true] %s197_s27 }
   0x8   : > { %p804_p0 = scmp.ge.s32.totalorder %s1146_s24, 1  ;;  %p45_p1 = scmp.eq.s32.totalorder %s1223_s28, 0 }
   0x9   : > { %p186_p2 = scmp.lt.s32.totalorder %s1146_s24, 3  ;;  %s1148_s30 = smov [#allocation5]  }
   0xa   : > { %s199_s7 = sshll.u32 %s1148_s30, 4  ;;  %s214_s10 = sshll.u32 %s1423_s3, 4  ;;  %s200_s7 = int_to_ptr.vmem [resolvable:$true] %s199_s7  ;;  %s215_s10 = int_to_ptr.hbm [resolvable:$true] %s214_s10 }
   0xb   : > { %p1228_p3 = pnand %p804_p0, %p186_p2  ;;  %s232_s14 = sshll.u32 %s1425_s5, 4  ;;  %s233_s14 = int_to_ptr.hbm [resolvable:$true] %s232_s14 }
   0xc   : > { %s1149_s15 = smov [#allocation7]   ;;  %s1150_s17 = smov 64  }
   0xd   : > { %p860_p4 = pneg %p1228_p3  ;;  %s216_s16 = sshll.u32 %s1149_s15, 4  ;;  %s217_s16 = int_to_ptr.vmem [resolvable:$true] %s216_s16 }
   0xe   : > { %s1151_s18 = smov 4   ;;  %s1152_s19 = smov [#allocation8]  }
   0xf   : > { %p1240_p6 = pnand %p860_p4, %p45_p1  ;;  %s234_s20 = sshll.u32 %s1152_s19, 4  ;;  %s235_s20 = int_to_ptr.vmem [resolvable:$true] %s234_s20 }
  0x10   : > { %s803_s25 = sadd.s32 4294967294, %s1146_s24   ;;  %s1255_s26 = sadd.s32 1, %s1146_s24  }
  0x11   : > { %863 = dma.hbm_to_vmem [thread:$0]  (!%p1240_p6), %s198_s27, 256, %s200_s7, [#allocation6], %s1150_s17, %s1150_s17, %s1151_s18  }
  0x12   : > { %866 = dma.hbm_to_vmem [thread:$0]  (!%p1240_p6), %s215_s10, 256, %s217_s16, [#allocation6], %s1150_s17, %s1150_s17, %s1151_s18  }
  0x13   : > { %869 = dma.hbm_to_vmem [thread:$0]  (!%p1240_p6), %s233_s14, 128, %s235_s20, [#allocation9]  }
  0x14   : > { %s31_s30 = sadd.s32 1, %s1142_s23  ;;  %s28_s27 = ssub.s32 %s1146_s24, %s1255_s26 }
  0x15   : > { %p38_p7 = scmp.ne.s32.totalorder %s1142_s23, %s1138_s22  ;;  %p29_p8 = scmp.eq.s32.totalorder %s28_s27, 0 }
  0x16   : > { %p39_p9 = scmp.eq.s32.totalorder %s1146_s24, 0  ;;  %p44_p10 = scmp.ne.s32.totalorder %s1138_s22, %s1134_s21 }
  0x17   : > { %p173_p11 = scmp.eq.s32.totalorder %s1223_s28, 1  ;;  %p179_p0 = scmp.eq.s32.totalorder %s803_s25, 1 }
  0x18   : > { %s1267_s7 = scalar_select %p29_p8, %s1142_s23, %s31_s30  }
  0x19   : > { %p1271_p12 = por %p45_p1, %p44_p10  ;;  %p1275_p13 = por %p173_p11, %p38_p7 }
  0x1a   : > { %p40_p2 = por %p39_p9, %p38_p7  ;;  %s245_s10 = sand.u32 1, %s1142_s23  }
  0x1b   : > { %p1280_p4 = por %p179_p0, %p44_p10  ;;  %p881_p6 = scmp.lt.s32.totalorder %s1146_s24, 2 }
  0x1c   : > { %s809_s12 = sshll.u32 %s245_s10, 3  ;;  %s810_s13 = sshll.u32 %s1146_s24, 3 }
  0x1d   : > { %s253_s16 = scalar_lea.hbm %s1420_s0, %s810_s13  ;;  %s249_s18 = scalar_lea.vmem [#allocation2], %s809_s12 }
  0x1e   : > { %s255_s17 = sshll.u32 %s253_s16, 4  ;;  %s257_s19 = sshll.u32 %s249_s18, 4  ;;  %s256_s17 = int_to_ptr.hbm [resolvable:$true] %s255_s17  ;;  %s258_s19 = int_to_ptr.vmem [resolvable:$true] %s257_s19 }
  0x1f   : > { %p1289_p8 = pnand %p881_p6, %p40_p2  ;;  %s246_s25 = scalar_lea.sflag [#allocation3], %s245_s10 }
  0x20   : > { %s1042_s30 = sshra.s32 %s256_s17, 4  ;;  %s1049_s12 = scalar_lea.hbm %s1420_s0, 16  ;;  %s1043_s30 = int_to_ptr.hbm [resolvable:$true] %s1042_s30 }
  0x21   : > { %s1044_s27 = scalar_lea.hbm %s1043_s30, 8  ;;  %p1046_p9 = pneg %p1289_p8 }
  0x22   : > { %p1045_p7 = scmp.ne.s32.totalorder %s1043_s30, %s1044_s27  ;;  %p1050_p0 = scmp.lt.s32.totalorder %s1043_s30, %s1420_s0 }
  0x23   : > { %p1051_p2 = scmp.lt.s32.totalorder %s1049_s12, %s1044_s27 }
  0x24   : > { %p1047_p10 = pnand %p1046_p9, %p1045_p7 }
  0x25   : > { %p1052_p6 = por %p1051_p2, %p1050_p0 }
  0x26   : > { %p1048_p11 = pneg %p1047_p10 }
  0x28   : > { %p1053_p5 = pnand %p1052_p6, %p1048_p11 }
  0x2a   : > { %1056 = shalt.err (!%p1053_p5)
}
  0x2b   : > { %873 = dma.hbm_to_vmem [thread:$0]  (!%p1289_p8), %s256_s17, 128, %s258_s19, %s246_s25  }
  0x2c   : > { %266 = sbr.rel (%p1228_p3) target bundleno = 1929 (0x789), region = 44  ;;  %s1306_s10 = sand.u32 (!%p1228_p3), 1, %s1138_s22  }
  0x2d   : > { %s812_s18 = sshll.u32 (!%p1228_p3), %s1306_s10, 3  ;;  %s269_s13 = scalar_lea.sflag (!%p1228_p3), [#allocation3], %s1306_s10 }
  0x2e   : > { %s272_s30 = scalar_lea.vmem (!%p1228_p3), [#allocation2], %s812_s18 }
  0x31   : > { %1117 = dma.done.wait (%p1271_p12), %s269_s13, 128  }
  0x32   : > { %1119 = vsyncadd (%p1271_p12), %s269_s13, 4294967168 }
  0x33   : > { %1121 = dma.done.wait (%p45_p1), [#allocation6], 512  }
  0x34   : > { %1123 = vsyncadd (%p45_p1), [#allocation6], 4294966784 }
  0x35   : > { %1125 = dma.done.wait (%p45_p1), [#allocation9], 128  }
  0x36   : > { %1127 = vsyncadd (%p45_p1), [#allocation9], 4294967168  ;;  %v843_v0 = vld [vmem:[#allocation5 + $0x8] sm:$0xff]  ;;  %v842_v1 = vld [vmem:[#allocation5] sm:$0xff]  ;;  %vm340_vm0 = vcmask 261120   ;;  %s1153_s17 = smov 88  }
  0x37   : > { %350 = vmatpush.bf16.msra.mxu0 %v843_v0  ;;  %v318_v2 = vld [vmem:[%s272_s30] sm:$0xff]  ;;  %s1154_s19 = smov 96   ;;  %s1155_s20 = smov 120   ;;  %vm371_vm1 = vcmask 64512   ;;  %v1337_v17 = vld [vmem:[#allocation8] sm:$0xff]  ;;  %vm408_vm2 = vcmask 1043456  }
  0x38   : > { %v319_v3 = vpack.c.bf16 %v318_v2, %v318_v2  ;;  %v934_v4 = vld [vmem:[%s1422_s2] ss:$0 sm:$0xff]  ;;  %s1156_s25 = smov 56   ;;  %s1157_s27 = smov 72   ;;  %v508_v24 = vld [vmem:[#allocation7 + $0x4] sm:$0xf] }
  0x39   : > { %s1158_s14 = smov 104   ;;  %v426_v22 = vld [vmem:[#allocation7] sm:$0xf]  ;;  %v513_v25 = vsel %vm408_vm2, %v508_v24, 0  ;;  %s1159_s12 = smov 64  }
  0x3a   : > { %v431_v23 = vsel %vm408_vm2, %v426_v22, 0  ;;  %s1160_s15 = smov 80   ;;  %s1161_s16 = smov 112  }
  0x3b   : > { %351 = vmatpush.bf16.msra.mxu0 %v842_v1  ;;  %440 = vmatpush.bf16.msra.mxu3 %v431_v23  ;;  %s1162_s29 = smov 48   ;;  %s1163_s8 = smov 40  }
  0x3e   : > { %825 = vmatmul.msk.bf16.vlgmr.msra.gmra.mxu0 %vm340_vm0, %v319_v3 }
  0x3f   : > { %522 = vmatpush.bf16.msrb.mxu0 %v513_v25 }
  0xbb   : > { %v353_v5 = vpop.f32.mrf.mxu0 }
  0xbc   : > { %v354_v6 = vadd.f32 %v934_v4, %v353_v5 }
  0xbe   : > { %v357_v7 = vmul.f32 0.35355338, %v354_v6  ;;  %v359_v8 = vpack.c.bf16 %v354_v6, %v354_v6 }
  0xc0   : > { %v367_v9 = vunpack.c.l.b16 %v359_v8  ;;  %v358_v10 = vpack.c.bf16 %v357_v7, %v357_v7 }
  0xc2   : > { %v1328_v11 = vpack.c.b16 %v367_v9, %v367_v9  ;;  %v448_v13 = vunpack.c.l.b16 %v358_v10  ;;  %v935_v9 = vld [vmem:[%s1424_s4] ss:$0 sm:$0xff] }
  0xc3   : > { %v355_v12 = vpop.f32.mrf.mxu0 }
  0xc4   : > { %452 = vrot.lane.b32.xlu2 %v1328_v11, %s1153_s17  ;;  %369 = vrot.lane.b32.xlu0 %v1328_v11, %s1154_s19  ;;  %v1332_v14 = vpack.c.b16 %v448_v13, %v448_v13  ;;  %s839_s17 = sshll.u32 %s1223_s28, 3 }
  0xcc   : > { %450 = vrot.lane.b32.xlu2 %v1332_v14, %s1155_s20 }
 0x11e   : > { %v453_v37 = vpop.permute.xlu2 %452 }
 0x11f   : > { %v458_v41 = vsel %vm371_vm1, %v453_v37, 0 }
 0x126   : > { %v451_v43 = vpop.permute.xlu2 %450 }
 0x136   : > { %v370_v15 = vpop.permute.xlu0 %369 }
 0x137   : > { %v376_v16 = vsel %vm371_vm1, %v370_v15, 0 }
 0x138   : > { %385 = vmatpush.bf16.xpose.msra.mxu1 %v376_v16 }
 0x13f   : > { %826 = vmatmul.msk.bf16.vlgmr.msra.gmra.mxu1 %vm371_vm1, %v358_v10 }
 0x1bc   : > { %v387_v18 = vpop.f32.mrf.mxu1 }
 0x1bd   : > { %v388_v19 = vadd.f32 %v387_v18, %v1337_v17 }
 0x1bf   : > { %v391_v20 = vsel %vm371_vm1, %v388_v19, -inf }
 0x1c0   : > { %392 = vmax.xlane.f32.xlu0 %v391_v20 }
 0x1c4   : > { %v389_v21 = vpop.f32.mrf.mxu1 }
 0x1d4   : > { %485 = vrot.lane.b32.xlu0 %v1328_v11, %s1156_s25  ;;  %s699_s25 = scalar_lea.hbm %s1426_s6, %s839_s17 }
 0x1dc   : > { %610 = vrot.lane.b32.xlu0 %v1328_v11, %s1157_s27  ;;  %s316_s27 = scalar_lea.vmem [#allocation10], %s812_s18  ;;  %s1092_s18 = scalar_lea.hbm %s1426_s6, 16 }
 0x1e4   : > { %608 = vrot.lane.b32.xlu0 %v1332_v14, %s1158_s14  ;;  %s701_s14 = sshll.u32 %s316_s27, 4  ;;  %s702_s14 = int_to_ptr.vmem [resolvable:$true] %s701_s14 }
 0x233   : > { %v393_v26 = vpop.xlane.xlu0 %392 }
 0x234   : > { %v394_v27 = vsub.f32 %v388_v19, %v393_v26 }
 0x236   : > { %v395_v28 = vmul.f32 1.442695, %v394_v27 }
 0x238   : > { %936 = vpow2.f32 %v395_v28 }
 0x23e   : > { %v937_v29 = vpop.eup %936 }
 0x23f   : > { %v397_v30 = vsel %vm371_vm1, %v937_v29, 0.0 }
 0x240   : > { %398 = vadd.xlane.f32.xlu1 %v397_v30 }
 0x246   : > { %v486_v31 = vpop.permute.xlu0 %485 }
 0x247   : > { %v491_v32 = vsel %vm408_vm2, %v486_v31, 0 }
 0x248   : > { %500 = vmatpush.bf16.msrb.mxu3 %v491_v32 }
 0x24e   : > { %v611_v33 = vpop.permute.xlu0 %610 }
 0x24f   : > { %v616_v34 = vsel %vm371_vm1, %v611_v33, 0 }
 0x250   : > { %625 = vmatpush.bf16.xpose.msra.mxu0 %v616_v34 }
 0x256   : > { %v609_v8 = vpop.permute.xlu0 %608 }
 0x259   : > { %403 = vrot.lane.b32.xlu1 %v1328_v11, %s1159_s12  ;;  %s703_s12 = sshll.u32 %s699_s25, 4  ;;  %s704_s12 = int_to_ptr.hbm [resolvable:$true] %s703_s12 }
 0x2b3   : > { %v399_v35 = vpop.xlane.xlu1 %398 }
 0x2b4   : > { %938 = vrcp.f32 %v399_v35  ;;  %v587_v35 = vld [vmem:[#allocation7 + $0x8] sm:$0xf] }
 0x2ba   : > { %v939_v36 = vpop.eup %938 }
 0x2bb   : > { %v401_v38 = vmul.f32 %v939_v36, %v937_v29  ;;  %v592_v36 = vsel %vm408_vm2, %v587_v35, 0 }
 0x2bd   : > { %v402_v42 = vpack.c.bf16 %v401_v38, %v401_v38 }
 0x2cb   : > { %v404_v39 = vpop.permute.xlu1 %403 }
 0x2cc   : > { %v410_v40 = vsel %vm408_vm2, %v404_v39, 0 }
 0x2cd   : > { %419 = vmatpush.bf16.msra.mxu2 %v410_v40 }
 0x2d0   : > { %827 = vmatmul.msk.bf16.vlgmr.msra.gmra.mxu2 %vm371_vm1, %v402_v42 }
 0x2d1   : > { %467 = vmatpush.bf16.xpose.msrb.mxu2 %v458_v41 }
 0x2e0   : > { %829 = vmatmul.msk.bf16.vlgmr.msrb.gmra.mxu2 %vm371_vm1, %v451_v43 }
 0x353   : > { %v421_v44 = vpop.f32.mrf.mxu2 }
 0x354   : > { %v425_v45 = vpack.c.bf16 %v421_v44, %v421_v44 }
 0x356   : > { %828 = vmatmul.msk.bf16.vlgmr.msra.gmra.mxu3 %vm371_vm1, %v425_v45  ;;  %v666_v45 = vld [vmem:[#allocation7 + $0xc] sm:$0xf] }
 0x357   : > { %601 = vmatpush.bf16.msra.mxu3 %v592_v36 }
 0x35b   : > { %v423_v46 = vpop.f32.mrf.mxu2 }
 0x35c   : > { %v671_v46 = vsel %vm408_vm2, %v666_v45, 0 }
 0x363   : > { %v469_v47 = vpop.f32.mrf.mxu2 }
 0x364   : > { %v470_v48 = vadd.f32 %v469_v47, %v1337_v17 }
 0x366   : > { %v473_v49 = vsel %vm371_vm1, %v470_v48, -inf }
 0x367   : > { %474 = vmax.xlane.f32.xlu2 %v473_v49 }
 0x36b   : > { %v471_v50 = vpop.f32.mrf.mxu2 }
 0x37f   : > { %531 = vrot.lane.b32.xlu2 %v1328_v11, %s1160_s15  ;;  %s689_s15 = scalar_lea.sflag [#allocation4], %s1306_s10 }
 0x3d9   : > { %v442_v51 = vpop.f32.mrf.mxu3 }
 0x3da   : > { %v475_v52 = vpop.xlane.xlu2 %474  ;;  %v446_v12 = vadd.f32 %v935_v9, %v442_v51 }
 0x3db   : > { %v476_v53 = vsub.f32 %v470_v48, %v475_v52 }
 0x3dd   : > { %v477_v54 = vmul.f32 1.442695, %v476_v53 }
 0x3df   : > { %940 = vpow2.f32 %v477_v54 }
 0x3e1   : > { %v444_v55 = vpop.f32.mrf.mxu3 }
 0x3e2   : > { %v532_v56 = vpop.permute.xlu2 %531 }
 0x3e3   : > { %v537_v57 = vsel %vm371_vm1, %v532_v56, 0 }
 0x3e4   : > { %546 = vmatpush.bf16.xpose.msrb.mxu1 %v537_v57 }
 0x3e5   : > { %v941_v58 = vpop.eup %940 }
 0x3e6   : > { %v479_v59 = vsel %vm371_vm1, %v941_v58, 0.0 }
 0x3e7   : > { %480 = vadd.xlane.f32.xlu1 %v479_v59 }
 0x400   : > { %529 = vrot.lane.b32.xlu1 %v1332_v14, %s1161_s16  ;;  %s1086_s16 = sshra.s32 %s704_s12, 4  ;;  %s1087_s16 = int_to_ptr.hbm [resolvable:$true] %s1086_s16 }
 0x401   : > { %s1088_s13 = scalar_lea.hbm %s1087_s16, 8  ;;  %p1093_p12 = scmp.lt.s32.totalorder %s1087_s16, %s1426_s6 }
 0x402   : > { %p1089_p1 = scmp.ne.s32.totalorder %s1087_s16, %s1088_s13  ;;  %p1094_p8 = scmp.lt.s32.totalorder %s1092_s18, %s1088_s13 }
 0x404   : > { %p1090_p3 = pnand %p1089_p1, %p1275_p13  ;;  %p1095_p7 = por %p1094_p8, %p1093_p12 }
 0x406   : > { %p1091_p5 = pneg %p1090_p3 }
 0x408   : > { %p1096_p9 = pnand %p1095_p7, %p1091_p5 }
 0x45a   : > { %v481_v60 = vpop.xlane.xlu1 %480 }
 0x45b   : > { %942 = vrcp.f32 %v481_v60 }
 0x461   : > { %v943_v61 = vpop.eup %942 }
 0x462   : > { %v483_v62 = vmul.f32 %v943_v61, %v941_v58 }
 0x464   : > { %v484_v63 = vpack.c.bf16 %v483_v62, %v483_v62 }
 0x466   : > { %830 = vmatmul.msk.bf16.vlgmr.msrb.gmra.mxu3 %vm371_vm1, %v484_v63 }
 0x472   : > { %v530_v0 = vpop.permute.xlu1 %529 }
 0x473   : > { %832 = vmatmul.msk.bf16.vlgmr.msrb.gmra.mxu1 %vm371_vm1, %v530_v0 }
 0x4e9   : > { %v502_v1 = vpop.f32.mrf.mxu3 }
 0x4ea   : > { %v506_v2 = vpack.c.bf16 %v502_v1, %v502_v1 }
 0x4ec   : > { %831 = vmatmul.msk.bf16.vlgmr.msrb.gmra.mxu0 %vm371_vm1, %v506_v2 }
 0x4f0   : > { %v548_v3 = vpop.f32.mrf.mxu1 }
 0x4f1   : > { %v549_v4 = vadd.f32 %v548_v3, %v1337_v17  ;;  %v504_v5 = vpop.f32.mrf.mxu3 }
 0x4f3   : > { %v552_v6 = vsel %vm371_vm1, %v549_v4, -inf }
 0x4f4   : > { %553 = vmax.xlane.f32.xlu2 %v552_v6 }
 0x4f8   : > { %v550_v7 = vpop.f32.mrf.mxu1 }
 0x4fc   : > { %835 = vmatmul.msk.bf16.vlgmr.msra.gmra.mxu0 %vm371_vm1, %v609_v8 }
 0x567   : > { %v554_v10 = vpop.xlane.xlu2 %553 }
 0x568   : > { %v555_v13 = vsub.f32 %v549_v4, %v554_v10 }
 0x569   : > { %v524_v14 = vpop.f32.mrf.mxu0 }
 0x56a   : > { %v556_v15 = vmul.f32 1.442695, %v555_v13  ;;  %v528_v16 = vadd.f32 %v524_v14, %v446_v12 }
 0x56c   : > { %944 = vpow2.f32 %v556_v15 }
 0x571   : > { %v526_v18 = vpop.f32.mrf.mxu0 }
 0x572   : > { %v945_v19 = vpop.eup %944 }
 0x573   : > { %v558_v20 = vsel %vm371_vm1, %v945_v19, 0.0 }
 0x574   : > { %559 = vadd.xlane.f32.xlu1 %v558_v20 }
 0x579   : > { %v627_v21 = vpop.f32.mrf.mxu0 }
 0x57a   : > { %v628_v22 = vadd.f32 %v627_v21, %v1337_v17 }
 0x57c   : > { %v631_v23 = vsel %vm371_vm1, %v628_v22, -inf }
 0x57d   : > { %632 = vmax.xlane.f32.xlu0 %v631_v23 }
 0x581   : > { %v629_v24 = vpop.f32.mrf.mxu0 }
 0x591   : > { %564 = vrot.lane.b32.xlu0 %v1328_v11, %s1162_s29 }
 0x5e7   : > { %v560_v28 = vpop.xlane.xlu1 %559 }
 0x5f0   : > { %v633_v25 = vpop.xlane.xlu0 %632 }
 0x5f1   : > { %v634_v26 = vsub.f32 %v628_v22, %v633_v25 }
 0x5f3   : > { %v635_v27 = vmul.f32 1.442695, %v634_v26 }
 0x5f5   : > { %946 = vpow2.f32 %v635_v27 }
 0x5f6   : > { %948 = vrcp.f32 %v560_v28 }
 0x5fb   : > { %v947_v29 = vpop.eup %946 }
 0x5fc   : > { %v637_v30 = vsel %vm371_vm1, %v947_v29, 0.0  ;;  %v949_v31 = vpop.eup %948 }
 0x5fd   : > { %638 = vadd.xlane.f32.xlu2 %v637_v30  ;;  %v562_v32 = vmul.f32 %v949_v31, %v945_v19 }
 0x5ff   : > { %v563_v34 = vpack.c.bf16 %v562_v32, %v562_v32 }
 0x603   : > { %v565_v17 = vpop.permute.xlu0 %564 }
 0x604   : > { %v570_v33 = vsel %vm408_vm2, %v565_v17, 0 }
 0x605   : > { %579 = vmatpush.bf16.msra.mxu2 %v570_v33 }
 0x608   : > { %833 = vmatmul.msk.bf16.vlgmr.msra.gmra.mxu2 %vm371_vm1, %v563_v34 }
 0x609   : > { %680 = vmatpush.bf16.msrb.mxu2 %v671_v46 }
 0x615   : > { %643 = vrot.lane.b32.xlu2 %v1328_v11, %s1163_s8 }
 0x670   : > { %v639_v37 = vpop.xlane.xlu2 %638 }
 0x671   : > { %950 = vrcp.f32 %v639_v37 }
 0x677   : > { %v951_v38 = vpop.eup %950 }
 0x678   : > { %v641_v39 = vmul.f32 %v951_v38, %v947_v29  ;;  %v644_v40 = vpop.permute.xlu2 %643 }
 0x679   : > { %v649_v41 = vsel %vm408_vm2, %v644_v40, 0 }
 0x67a   : > { %v642_v42 = vpack.c.bf16 %v641_v39, %v641_v39  ;;  %658 = vmatpush.bf16.msra.mxu1 %v649_v41 }
 0x67d   : > { %836 = vmatmul.msk.bf16.vlgmr.msra.gmra.mxu1 %vm371_vm1, %v642_v42 }
 0x68b   : > { %v581_v43 = vpop.f32.mrf.mxu2 }
 0x68c   : > { %v585_v44 = vpack.c.bf16 %v581_v43, %v581_v43 }
 0x68e   : > { %834 = vmatmul.msk.bf16.vlgmr.msra.gmra.mxu3 %vm371_vm1, %v585_v44 }
 0x693   : > { %v583_v11 = vpop.f32.mrf.mxu2 }
 0x6fa   : > { %v660_v47 = vpop.f32.mrf.mxu1 }
 0x6fb   : > { %v664_v48 = vpack.c.bf16 %v660_v47, %v660_v47 }
 0x6fd   : > { %837 = vmatmul.msk.bf16.vlgmr.msrb.gmra.mxu2 %vm371_vm1, %v664_v48 }
 0x702   : > { %v662_v49 = vpop.f32.mrf.mxu1 }
 0x711   : > { %v603_v50 = vpop.f32.mrf.mxu3 }
 0x712   : > { %v607_v51 = vadd.f32 %v603_v50, %v528_v16 }
 0x719   : > { %v605_v52 = vpop.f32.mrf.mxu3 }
 0x780   : > { %v682_v53 = vpop.f32.mrf.mxu2 }
 0x781   : > { %v686_v54 = vadd.f32 %v682_v53, %v607_v51 }
 0x783   : > { %687 = vst.msk [vmem:[%s316_s27] sm:$0xff] %vm340_vm0, %v686_v54 }
 0x784   : > { %1099 = shalt.err (!%p1096_p9)
}
 0x785   : > { %858 = dma.vmem_to_hbm [thread:$0]  (%p1275_p13), %s702_s14, 128, %s704_s12, %s689_s15  }
 0x788   : > { %v684_v55 = vpop.f32.mrf.mxu2 }
 0x789 PF: > { %s715_s10 = sand.u32 1, %s1134_s21   ;;  %p1433_p10 = scmp.ge.s32.totalorder %s1146_s24, 2 }
 0x78a   : > { %s716_s17 = scalar_lea.sflag [#allocation4], %s715_s10 }
 0x78b   : > { %p875_p11 = pnand %p1433_p10, %p1280_p4 }
 0x78d   : > { %p876_p0 = pneg %p875_p11 }
 0x78f   : > { %1129 = dma.done.wait (%p876_p0), %s716_s17, 128  }
 0x790   : > { %1131 = vsyncadd (%p876_p0), %s716_s17, 4294967168  ;;  %p21_p2 = scmp.ge.s32.totalorder %s1255_s26, 4   ;;  %s1434_s21 = smov %s1138_s22 }
 0x791   : > { %s1435_s22 = smov %s1142_s23  ;;  %s1436_s23 = smov %s1267_s7 }
 0x792   : > { %s1437_s24 = smov %s1255_s26  ;;  %23 = sbr.rel (!%p21_p2) target bundleno = 7 (0x7), region = 104 }
 0x797   :  { %722 = vsyncpa [#allocation3], 1 }
 0x798   :  { %724 = vsyncpa [#allocation3 + $0x1], 1 }
 0x799   :  { %725 = vsyncpa [#allocation6], 1 }
 0x79a   :  { %726 = vsyncpa [#allocation9], 1 }
 0x79b   :  { %727 = vsyncpa [#allocation4], 1 }
 0x79c   :  { %729 = vsyncpa [#allocation4 + $0x1], 1 }

</bundles_post_ra>
